<compile_context>
chip_gen: v7x
topology: tpu7x:2x2x1
jax: 0.10.0
libtpu: 0.0.40
codegen_flags: <defaults>
</compile_context>

<pallas_src>
import functools

import jax
import jax.numpy as jnp
from jax.experimental import pallas as pl
from jax.experimental.pallas import tpu as pltpu

LOG_SIG_MAX = 2.0
LOG_SIG_MIN = -20.0

_LANE = 128      # last-dim tile (lanes)
_SUBLANE = 8     # second-to-last-dim tile (sublanes)


def _round_up(x, m):
    return ((x + m - 1) // m) * m


def _actor_kernel(num_actions, state_ref, w1_ref, b1_ref, w2_ref, b2_ref,
                  wh_ref, bh_ref, out_ref):
    x = state_ref[...]

    # linear1 + relu
    h1 = jnp.dot(x, w1_ref[...], preferred_element_type=jnp.float32) + b1_ref[...]
    h1 = jnp.maximum(h1, 0.0).astype(w2_ref.dtype)

    # linear2 + relu
    h2 = jnp.dot(h1, w2_ref[...], preferred_element_type=jnp.float32) + b2_ref[...]
    h2 = jnp.maximum(h2, 0.0).astype(wh_ref.dtype)

    # fused head: columns [0, A) = mean, [A, 2A) = log_std, rest = padding
    head = jnp.dot(h2, wh_ref[...], preferred_element_type=jnp.float32) + bh_ref[...]

    # clamp only the log_std columns (mean columns pass through unchanged)
    col = jax.lax.broadcasted_iota(jnp.int32, head.shape, 1)
    head = jnp.where(col >= num_actions,
                     jnp.clip(head, LOG_SIG_MIN, LOG_SIG_MAX),
                     head)

    out_ref[...] = head.astype(out_ref.dtype)


def actor_forward(state, params, *, batch_tile=256, compute_dtype=jnp.float32):
    """Fused Actor.forward. Returns (mean, log_std), each (B, num_actions).

    `params` holds unpadded weights in (in_features, out_features) layout
    (i.e. already transposed vs. torch's (out, in)). Fusing/padding happens
    here; for a hot RL loop you would pre-pad once instead.
    """
    B, num_inputs = state.shape
    hidden = params["w1"].shape[1]
    num_actions = params["wm"].shape[1]

    in_p = _round_up(num_inputs, _LANE)
    h_p = _round_up(hidden, _LANE)
    a2 = 2 * num_actions
    a2_p = _round_up(a2, _LANE)

    # Batch tiling: tile is a multiple of 8 sublanes; grid over batch.
    tb = min(_round_up(B, _SUBLANE), batch_tile)
    b_p = _round_up(B, tb)
    grid = (b_p // tb,)

    cd = compute_dtype
    f32 = jnp.float32

    def pad2(a, rows, cols, dtype):
        a = a.astype(dtype)
        return jnp.pad(a, ((0, rows - a.shape[0]), (0, cols - a.shape[1])))

    def pad_bias(b, cols):
        # Biases stay f32 (added to the f32 accumulator), shaped (1, N).
        return jnp.pad(b.astype(f32), (0, cols - b.shape[0])).reshape(1, cols)

    state_p = pad2(state, b_p, in_p, cd)
    w1 = pad2(params["w1"], in_p, h_p, cd)
    b1 = pad_bias(params["b1"], h_p)
    w2 = pad2(params["w2"], h_p, h_p, cd)
    b2 = pad_bias(params["b2"], h_p)
    wh = pad2(jnp.concatenate([params["wm"], params["ws"]], axis=1), h_p, a2_p, cd)
    bh = pad_bias(jnp.concatenate([params["bm"], params["bs"]], axis=0), a2_p)

    args = (state_p, w1, b1, w2, b2, wh, bh)

    flops = 2 * b_p * (in_p * h_p + h_p * h_p + h_p * a2_p)
    bytes_accessed = sum(int(a.size) * a.dtype.itemsize for a in args) \
        + b_p * a2_p * jnp.dtype(f32).itemsize

    out = pl.pallas_call(
        functools.partial(_actor_kernel, num_actions),
        out_shape=jax.ShapeDtypeStruct((b_p, a2_p), f32),
        grid=grid,
        in_specs=[
            pl.BlockSpec((tb, in_p), lambda i: (i, 0)),      # state tile
            pl.BlockSpec((in_p, h_p), lambda i: (0, 0)),     # w1 (resident)
            pl.BlockSpec((1, h_p), lambda i: (0, 0)),        # b1
            pl.BlockSpec((h_p, h_p), lambda i: (0, 0)),      # w2
            pl.BlockSpec((1, h_p), lambda i: (0, 0)),        # b2
            pl.BlockSpec((h_p, a2_p), lambda i: (0, 0)),     # fused head W
            pl.BlockSpec((1, a2_p), lambda i: (0, 0)),       # fused head b
        ],
        out_specs=pl.BlockSpec((tb, a2_p), lambda i: (i, 0)),
        compiler_params=pltpu.CompilerParams(
            dimension_semantics=("parallel",)),
        cost_estimate=pl.CostEstimate(
            flops=flops, transcendentals=0, bytes_accessed=bytes_accessed),
        # TODO(synk): if hidden_dim is ever scaled to >=2048 on v7x (64 MiB
        # VMEM), tile the K dimension of each layer instead of using
        # full-array weight blocks, and set vmem_limit_bytes explicitly.
    )(*args)

    mean = out[:B, :num_actions]
    log_std = out[:B, num_actions:a2]
    return mean, log_std


def _xavier_uniform(key, fan_in, fan_out):
    # torch.nn.init.xavier_uniform_ with gain=1 on a (out, in) weight;
    # returned here in the transposed (in, out) layout used by the kernel.
    limit = (6.0 / (fan_in + fan_out)) ** 0.5
    return jax.random.uniform(key, (fan_in, fan_out), jnp.float32, -limit, limit)


def init_actor_params(key, num_inputs, num_actions, hidden_dim):
    k1, k2, k3, k4 = jax.random.split(key, 4)
    return {
        "w1": _xavier_uniform(k1, num_inputs, hidden_dim),
        "b1": jnp.zeros((hidden_dim,), jnp.float32),
        "w2": _xavier_uniform(k2, hidden_dim, hidden_dim),
        "b2": jnp.zeros((hidden_dim,), jnp.float32),
        "wm": _xavier_uniform(k3, hidden_dim, num_actions),
        "bm": jnp.zeros((num_actions,), jnp.float32),
        "ws": _xavier_uniform(k4, hidden_dim, num_actions),
        "bs": jnp.zeros((num_actions,), jnp.float32),
    }


def actor_forward_ref(state, p):
    """Pure-JAX reference matching the PyTorch Actor.forward."""
    h1 = jax.nn.relu(state @ p["w1"] + p["b1"])
    h2 = jax.nn.relu(h1 @ p["w2"] + p["b2"])
    mean = h2 @ p["wm"] + p["bm"]
    log_std = jnp.clip(h2 @ p["ws"] + p["bs"], LOG_SIG_MIN, LOG_SIG_MAX)
    return mean, log_std


if __name__ == "__main__":
    batch = 4
    num_inputs = 16
    num_actions = 4
    hidden_dim = 32

    key = jax.random.PRNGKey(0)
    pkey, skey = jax.random.split(key)
    params = init_actor_params(pkey, num_inputs, num_actions, hidden_dim)
    state = jax.random.normal(skey, (batch, num_inputs), jnp.float32)

    mean, log_std = actor_forward(state, params)
    jax.block_until_ready((mean, log_std))

    mean_ref, log_std_ref = actor_forward_ref(state, params)
    assert mean.shape == (batch, num_actions)
    assert log_std.shape == (batch, num_actions)
    assert jnp.allclose(mean, mean_ref, atol=1e-5, rtol=1e-5)
    assert jnp.allclose(log_std, log_std_ref, atol=1e-5, rtol=1e-5)
    assert bool(jnp.all(log_std <= LOG_SIG_MAX)) and bool(jnp.all(log_std >= LOG_SIG_MIN))

    # Also exercise a batch large enough to use the batch grid (2 tiles).
    big_state = jax.random.normal(jax.random.PRNGKey(1), (300, num_inputs), jnp.float32)
    bm, bl = actor_forward(big_state, params)
    jax.block_until_ready((bm, bl))
    bm_ref, bl_ref = actor_forward_ref(big_state, params)
    assert jnp.allclose(bm, bm_ref, atol=1e-5, rtol=1e-5)
    assert jnp.allclose(bl, bl_ref, atol=1e-5, rtol=1e-5)

    print("KERNEL_OK")
</pallas_src>

<mosaic_0001>
module attributes {stable_mosaic.version = 11 : i64} {
  func.func @_actor_kernel(%arg0: i32, %arg1: memref<8x128xf32, #tpu.memory_space<vmem>>, %arg2: memref<128x128xf32, #tpu.memory_space<vmem>>, %arg3: memref<1x128xf32, #tpu.memory_space<vmem>>, %arg4: memref<128x128xf32, #tpu.memory_space<vmem>>, %arg5: memref<1x128xf32, #tpu.memory_space<vmem>>, %arg6: memref<128x128xf32, #tpu.memory_space<vmem>>, %arg7: memref<1x128xf32, #tpu.memory_space<vmem>>, %arg8: memref<8x128xf32, #tpu.memory_space<vmem>>) attributes {dimension_semantics = [#tpu.dimension_semantics<parallel>], iteration_bounds = array<i64: 1>, scalar_prefetch = 0 : i64, scratch_operands = 0 : i64, tpu.core_type = #tpu.core_type<tc>, window_params = [{transform_indices = @transform_0, window_bounds = array<i64: 8, 128>}, {pipeline_mode = #tpu.pipeline_mode<synchronous>, transform_indices = @transform_1, window_bounds = array<i64: 128, 128>}, {pipeline_mode = #tpu.pipeline_mode<synchronous>, transform_indices = @transform_2, window_bounds = array<i64: 1, 128>}, {pipeline_mode = #tpu.pipeline_mode<synchronous>, transform_indices = @transform_3, window_bounds = array<i64: 128, 128>}, {pipeline_mode = #tpu.pipeline_mode<synchronous>, transform_indices = @transform_4, window_bounds = array<i64: 1, 128>}, {pipeline_mode = #tpu.pipeline_mode<synchronous>, transform_indices = @transform_5, window_bounds = array<i64: 128, 128>}, {pipeline_mode = #tpu.pipeline_mode<synchronous>, transform_indices = @transform_6, window_bounds = array<i64: 1, 128>}, {transform_indices = @transform_7, window_bounds = array<i64: 8, 128>}]} {
    %c0 = arith.constant 0 : index
    %c0_0 = arith.constant 0 : index
    %0 = vector.load %arg1[%c0, %c0_0] : memref<8x128xf32, #tpu.memory_space<vmem>>, vector<8x128xf32>
    %c0_1 = arith.constant 0 : index
    %c0_2 = arith.constant 0 : index
    %1 = vector.load %arg2[%c0_1, %c0_2] : memref<128x128xf32, #tpu.memory_space<vmem>>, vector<128x128xf32>
    %cst = arith.constant dense<0.000000e+00> : vector<8x128xf32>
    %2 = tpu.matmul %0, %1, %cst {dimension_numbers = #tpu.dot_dimension_numbers<[1], [0], [0], [1], [0, 0, 1, 1], [], []>} : vector<8x128xf32>, vector<128x128xf32>, vector<8x128xf32> -> vector<8x128xf32>
    %c0_3 = arith.constant 0 : index
    %c0_4 = arith.constant 0 : index
    %3 = vector.load %arg3[%c0_3, %c0_4] : memref<1x128xf32, #tpu.memory_space<vmem>>, vector<1x128xf32>
    %4 = vector.broadcast %3 : vector<1x128xf32> to vector<8x128xf32>
    %5 = arith.addf %2, %4 : vector<8x128xf32>
    %cst_5 = arith.constant 0.000000e+00 : f32
    %6 = vector.broadcast %cst_5 : f32 to vector<8x128xf32>
    %7 = arith.maximumf %5, %6 : vector<8x128xf32>
    %c0_6 = arith.constant 0 : index
    %c0_7 = arith.constant 0 : index
    %8 = vector.load %arg4[%c0_6, %c0_7] : memref<128x128xf32, #tpu.memory_space<vmem>>, vector<128x128xf32>
    %cst_8 = arith.constant dense<0.000000e+00> : vector<8x128xf32>
    %9 = tpu.matmul %7, %8, %cst_8 {dimension_numbers = #tpu.dot_dimension_numbers<[1], [0], [0], [1], [0, 0, 1, 1], [], []>} : vector<8x128xf32>, vector<128x128xf32>, vector<8x128xf32> -> vector<8x128xf32>
    %c0_9 = arith.constant 0 : index
    %c0_10 = arith.constant 0 : index
    %10 = vector.load %arg5[%c0_9, %c0_10] : memref<1x128xf32, #tpu.memory_space<vmem>>, vector<1x128xf32>
    %11 = vector.broadcast %10 : vector<1x128xf32> to vector<8x128xf32>
    %12 = arith.addf %9, %11 : vector<8x128xf32>
    %cst_11 = arith.constant 0.000000e+00 : f32
    %13 = vector.broadcast %cst_11 : f32 to vector<8x128xf32>
    %14 = arith.maximumf %12, %13 : vector<8x128xf32>
    %c0_12 = arith.constant 0 : index
    %c0_13 = arith.constant 0 : index
    %15 = vector.load %arg6[%c0_12, %c0_13] : memref<128x128xf32, #tpu.memory_space<vmem>>, vector<128x128xf32>
    %cst_14 = arith.constant dense<0.000000e+00> : vector<8x128xf32>
    %16 = tpu.matmul %14, %15, %cst_14 {dimension_numbers = #tpu.dot_dimension_numbers<[1], [0], [0], [1], [0, 0, 1, 1], [], []>} : vector<8x128xf32>, vector<128x128xf32>, vector<8x128xf32> -> vector<8x128xf32>
    %c0_15 = arith.constant 0 : index
    %c0_16 = arith.constant 0 : index
    %17 = vector.load %arg7[%c0_15, %c0_16] : memref<1x128xf32, #tpu.memory_space<vmem>>, vector<1x128xf32>
    %18 = vector.broadcast %17 : vector<1x128xf32> to vector<8x128xf32>
    %19 = arith.addf %16, %18 : vector<8x128xf32>
    %20 = tpu.iota {dimensions = array<i32: 1>} : vector<8x128xi32>
    %c4_i32 = arith.constant 4 : i32
    %21 = vector.broadcast %c4_i32 : i32 to vector<8x128xi32>
    %22 = arith.cmpi sge, %20, %21 : vector<8x128xi32>
    %cst_17 = arith.constant -2.000000e+01 : f32
    %cst_18 = arith.constant 2.000000e+00 : f32
    %23 = vector.broadcast %cst_17 : f32 to vector<8x128xf32>
    %24 = arith.maximumf %23, %19 : vector<8x128xf32>
    %25 = vector.broadcast %cst_18 : f32 to vector<8x128xf32>
    %26 = arith.minimumf %25, %24 : vector<8x128xf32>
    %27 = arith.select %22, %26, %19 : vector<8x128xi1>, vector<8x128xf32>
    %c0_19 = arith.constant 0 : index
    %c0_20 = arith.constant 0 : index
    %28 = vector.load %arg8[%c0_19, %c0_20] : memref<8x128xf32, #tpu.memory_space<vmem>>, vector<8x128xf32>
    tpu.vector_store %arg8[%c0_19, %c0_20], %27 {strides = array<i32>} : memref<8x128xf32, #tpu.memory_space<vmem>>, vector<8x128xf32>,
    return
  }
  func.func @transform_0(%arg0: i32) -> (i32, i32) {
    %c0_i32 = arith.constant 0 : i32
    %c0_i32_0 = arith.constant 0 : i32
    return %arg0, %c0_i32 : i32, i32
  }
  func.func @transform_1(%arg0: i32) -> (i32, i32) {
    %c0_i32 = arith.constant 0 : i32
    %c0_i32_0 = arith.constant 0 : i32
    %c0_i32_1 = arith.constant 0 : i32
    return %c0_i32, %c0_i32_0 : i32, i32
  }
  func.func @transform_2(%arg0: i32) -> (i32, i32) {
    %c0_i32 = arith.constant 0 : i32
    %c0_i32_0 = arith.constant 0 : i32
    %c0_i32_1 = arith.constant 0 : i32
    return %c0_i32, %c0_i32_0 : i32, i32
  }
  func.func @transform_3(%arg0: i32) -> (i32, i32) {
    %c0_i32 = arith.constant 0 : i32
    %c0_i32_0 = arith.constant 0 : i32
    %c0_i32_1 = arith.constant 0 : i32
    return %c0_i32, %c0_i32_0 : i32, i32
  }
  func.func @transform_4(%arg0: i32) -> (i32, i32) {
    %c0_i32 = arith.constant 0 : i32
    %c0_i32_0 = arith.constant 0 : i32
    %c0_i32_1 = arith.constant 0 : i32
    return %c0_i32, %c0_i32_0 : i32, i32
  }
  func.func @transform_5(%arg0: i32) -> (i32, i32) {
    %c0_i32 = arith.constant 0 : i32
    %c0_i32_0 = arith.constant 0 : i32
    %c0_i32_1 = arith.constant 0 : i32
    return %c0_i32, %c0_i32_0 : i32, i32
  }
  func.func @transform_6(%arg0: i32) -> (i32, i32) {
    %c0_i32 = arith.constant 0 : i32
    %c0_i32_0 = arith.constant 0 : i32
    %c0_i32_1 = arith.constant 0 : i32
    return %c0_i32, %c0_i32_0 : i32, i32
  }
  func.func @transform_7(%arg0: i32) -> (i32, i32) {
    %c0_i32 = arith.constant 0 : i32
    %c0_i32_0 = arith.constant 0 : i32
    return %arg0, %c0_i32 : i32, i32
  }
}

</mosaic_0001>

<bundles_post_ra>
// kernel: tpu_custom_call.1
= control target key start
LH: loop header
LB: loop body
LE: loop exit
PB: predicated region body
PF: predicated region fallthrough
CT: control target
= control target key end

     0   :  { %12 = vsyncpa [#allocation3], 0  ;;  %s903_s0 = inlined_call_operand.hbm [shape: f32[8,128], index: 0, kind: input, shape index: {}]   ;;  %s904_s1 = inlined_call_operand.hbm [shape: f32[128,128], index: 1, kind: input, shape index: {}]   ;;  %s905_s2 = inlined_call_operand.vmem [shape: f32[1,128], index: 2, kind: input, shape index: {}]   ;;  %s906_s3 = inlined_call_operand.hbm [shape: f32[128,128], index: 3, kind: input, shape index: {}]   ;;  %s907_s4 = inlined_call_operand.vmem [shape: f32[1,128], index: 4, kind: input, shape index: {}]   ;;  %s908_s5 = inlined_call_operand.hbm [shape: f32[128,128], index: 5, kind: input, shape index: {}]   ;;  %s909_s6 = inlined_call_operand.vmem [shape: f32[1,128], index: 6, kind: input, shape index: {}]   ;;  %s910_s7 = inlined_call_operand.hbm [shape: f32[8,128], index: 7, kind: output, shape index: {}]  }
   0x1   :  { %13 = vsyncpa [#allocation6], 0 }
   0x2   :  { %14 = vsyncpa [#allocation9], 0 }
   0x3   :  { %15 = vsyncpa [#allocation4], 0  ;;  %s745_s24 = smov [#allocation5]   ;;  %s627_s28 = scalar_lea.hbm %s904_s1, 2048 }
   0x4   :  { %s31_s25 = sshll.u32 %s745_s24, 4  ;;  %p628_p0 = scmp.ne.s32.totalorder %s904_s1, %s627_s28  ;;  %s32_s25 = int_to_ptr.vmem [resolvable:$true] %s31_s25 }
   0x5   :  { %p631_p1 = scmp.lt.u32.totalorder %s627_s28, %s904_s1 }
   0x7   :  { %p633_p2 = pnand %p631_p1, %p628_p0 }
   0x9   :  { %636 = shalt.err (!%p633_p2)
}
   0xa   :  { %s637_s10 = scalar_lea.vmem %s32_s25, 2048  ;;  %p642_p4 = scmp.lt.s32.totalorder %s32_s25, %s32_s25 }
   0xb   :  { %p638_p3 = scmp.ne.s32.totalorder %s32_s25, %s637_s10  ;;  %p643_p5 = scmp.lt.s32.totalorder %s637_s10, %s637_s10 }
   0xd   :  { %p644_p6 = por %p643_p5, %p642_p4 }
   0xf   :  { %p645_p7 = pnand %p644_p6, %p638_p3 }
  0x11   :  { %648 = shalt.err (!%p645_p7)
}
  0x12   :  { %s746_s11 = smov 128   ;;  %s747_s12 = smov 8  }
  0x13   :  { %37 = dma.hbm_to_vmem [thread:$0]  %s904_s1, 2048, %s32_s25, [#allocation6], %s746_s11, %s746_s11, %s747_s12  }
  0x14   :  { %s748_s15 = smov [#allocation2]   ;;  %s749_s17 = smov [#allocation7]  }
  0x15   :  { %s22_s16 = sshll.u32 %s748_s15, 4  ;;  %s45_s18 = sshll.u32 %s749_s17, 4  ;;  %s23_s16 = int_to_ptr.vmem [resolvable:$true] %s22_s16  ;;  %s46_s18 = int_to_ptr.vmem [resolvable:$true] %s45_s18 }
  0x16   :  { %s649_s21 = scalar_lea.hbm %s903_s0, 128 }
  0x17   :  { %p650_p8 = scmp.ne.s32.totalorder %s903_s0, %s649_s21  ;;  %p653_p9 = scmp.lt.u32.totalorder %s649_s21, %s903_s0 }
  0x19   :  { %p655_p10 = pnand %p653_p9, %p650_p8 }
  0x1b   :  { %658 = shalt.err (!%p655_p10)
}
  0x1c   :  { %s659_s1 = scalar_lea.vmem %s23_s16, 128  ;;  %p664_p12 = scmp.lt.s32.totalorder %s23_s16, %s23_s16 }
  0x1d   :  { %p660_p11 = scmp.ne.s32.totalorder %s23_s16, %s659_s1  ;;  %p665_p13 = scmp.lt.s32.totalorder %s659_s1, %s659_s1 }
  0x1f   :  { %p666_p0 = por %p665_p13, %p664_p12 }
  0x21   :  { %p667_p1 = pnand %p666_p0, %p660_p11 }
  0x23   :  { %670 = shalt.err (!%p667_p1)
}
  0x24   :  { %25 = dma.hbm_to_vmem [thread:$0]  %s903_s0, 128, %s23_s16, [#allocation3]  }
  0x25   :  { %s671_s30 = scalar_lea.hbm %s906_s3, 2048 }
  0x26   :  { %p672_p2 = scmp.ne.s32.totalorder %s906_s3, %s671_s30  ;;  %p675_p3 = scmp.lt.u32.totalorder %s671_s30, %s906_s3 }
  0x28   :  { %p677_p4 = pnand %p675_p3, %p672_p2 }
  0x2a   :  { %680 = shalt.err (!%p677_p4)
}
  0x2b   :  { %s681_s14 = scalar_lea.vmem %s46_s18, 2048  ;;  %p686_p6 = scmp.lt.s32.totalorder %s46_s18, %s46_s18 }
  0x2c   :  { %p682_p5 = scmp.ne.s32.totalorder %s46_s18, %s681_s14  ;;  %p687_p7 = scmp.lt.s32.totalorder %s681_s14, %s681_s14 }
  0x2e   :  { %p688_p8 = por %p687_p7, %p686_p6 }
  0x30   :  { %p689_p9 = pnand %p688_p8, %p682_p5 }
  0x32   :  { %692 = shalt.err (!%p689_p9)
}
  0x33   :  { %51 = dma.hbm_to_vmem [thread:$0]  %s906_s3, 2048, %s46_s18, [#allocation6], %s746_s11, %s746_s11, %s747_s12  }
  0x34   :  { %s750_s16 = smov [#allocation8]   ;;  %s693_s21 = scalar_lea.hbm %s908_s5, 2048 }
  0x35   :  { %s59_s17 = sshll.u32 %s750_s16, 4  ;;  %p694_p10 = scmp.ne.s32.totalorder %s908_s5, %s693_s21  ;;  %s60_s17 = int_to_ptr.vmem [resolvable:$true] %s59_s17 }
  0x36   :  { %p697_p11 = scmp.lt.u32.totalorder %s693_s21, %s908_s5 }
  0x38   :  { %p699_p12 = pnand %p697_p11, %p694_p10 }
  0x3a   :  { %702 = shalt.err (!%p699_p12)
}
  0x3b   :  { %s703_s1 = scalar_lea.vmem %s60_s17, 2048  ;;  %p708_p0 = scmp.lt.s32.totalorder %s60_s17, %s60_s17 }
  0x3c   :  { %p704_p13 = scmp.ne.s32.totalorder %s60_s17, %s703_s1  ;;  %p709_p1 = scmp.lt.s32.totalorder %s703_s1, %s703_s1 }
  0x3e   :  { %p710_p2 = por %p709_p1, %p708_p0 }
  0x40   :  { %p711_p3 = pnand %p710_p2, %p704_p13 }
  0x42   :  { %714 = shalt.err (!%p711_p3)
}
  0x43   :  { %65 = dma.hbm_to_vmem [thread:$0]  %s908_s5, 2048, %s60_s17, [#allocation9], %s746_s11, %s746_s11, %s747_s12  }
  0x44   :  { %737 = dma.done.wait [#allocation3], 128  }
  0x45   :  { %738 = vsyncadd [#allocation3], 4294967168 }
  0x46   :  { %739 = dma.done.wait [#allocation6], 4096  }
  0x47   :  { %740 = vsyncadd [#allocation6], 4294963200 }
  0x48   :  { %741 = dma.done.wait [#allocation9], 2048  }
  0x49   :  { %742 = vsyncadd [#allocation9], 4294965248  ;;  %v751_v0 = vmov 0.0|0.0   ;;  %vm752_vm0 = vmmov 0   ;;  %v753_v1 = vmov 0.0   ;;  %v81_v2 = vld [vmem:[#allocation5] sm:$0xff] }
  0x4a   :  { %545 = vmatprep.subr.bf16.mxu0 %v751_v0  ;;  %472 = vmatprep.mubr.msk.f32.mxu0 %vm752_vm0, %v753_v1  ;;  %v82_v3 = vld [vmem:[#allocation5 + $0x8] sm:$0xff]  ;;  %v83_v4 = vld [vmem:[#allocation5 + $0x10] sm:$0xff]  ;;  %v84_v6 = vld [vmem:[#allocation5 + $0x18] sm:$0xff]  ;;  %s754_s28 = smov [#allocation10]  }
  0x4b   :  { %569 = vmatprep.subr.bf16.mxu1 %v751_v0  ;;  %507 = vmatprep.mubr.msk.f32.mxu1 %vm752_vm0, %v753_v1  ;;  %v546_v5 = vpack.c.bf16 %v82_v3, %v81_v2  ;;  %v549_v7 = vpack.c.bf16 %v84_v6, %v83_v4  ;;  %v85_v8 = vld [vmem:[#allocation5 + $0x20] sm:$0xff]  ;;  %v86_v9 = vld [vmem:[#allocation5 + $0x28] sm:$0xff]  ;;  %v177_v12 = vld [vmem:[#allocation7 + $0x10] sm:$0xff]  ;;  %s375_s29 = sshll.u32 %s754_s28, 4  ;;  %s376_s29 = int_to_ptr.vmem [resolvable:$true] %s375_s29 }
  0x4c   :  { %v175_v10 = vld [vmem:[#allocation7] sm:$0xff]  ;;  %v176_v11 = vld [vmem:[#allocation7 + $0x8] sm:$0xff]  ;;  %v178_v13 = vld [vmem:[#allocation7 + $0x18] sm:$0xff]  ;;  %v552_v14 = vpack.c.bf16 %v86_v9, %v85_v8  ;;  %p720_p5 = scmp.lt.s32.totalorder %s376_s29, %s376_s29 }
  0x4d   :  { %547 = vmatpush3.bf16.msra.mxu0 %v546_v5  ;;  %v570_v15 = vpack.c.bf16 %v176_v11, %v175_v10  ;;  %v87_v16 = vld [vmem:[#allocation5 + $0x30] sm:$0xff]  ;;  %v88_v17 = vld [vmem:[#allocation5 + $0x38] sm:$0xff]  ;;  %v573_v18 = vpack.c.bf16 %v178_v13, %v177_v12  ;;  %v179_v19 = vld [vmem:[#allocation7 + $0x20] sm:$0xff] }
  0x4e   :  { %548 = vmatprep.subr.bf16.mxu0 %v751_v0  ;;  %v180_v20 = vld [vmem:[#allocation7 + $0x28] sm:$0xff]  ;;  %v555_v21 = vpack.c.bf16 %v88_v17, %v87_v16  ;;  %v89_v22 = vld [vmem:[#allocation5 + $0x40] sm:$0xff]  ;;  %v181_v25 = vld [vmem:[#allocation7 + $0x30] sm:$0xff] }
  0x4f   :  { %571 = vmatpush3.bf16.msra.mxu1 %v570_v15  ;;  %v90_v23 = vld [vmem:[#allocation5 + $0x48] sm:$0xff]  ;;  %v576_v24 = vpack.c.bf16 %v180_v20, %v179_v19  ;;  %v182_v26 = vld [vmem:[#allocation7 + $0x38] sm:$0xff]  ;;  %v91_v28 = vld [vmem:[#allocation5 + $0x50] sm:$0xff] }
  0x50   :  { %572 = vmatprep.subr.bf16.mxu1 %v751_v0  ;;  %v558_v27 = vpack.c.bf16 %v90_v23, %v89_v22  ;;  %v92_v29 = vld [vmem:[#allocation5 + $0x58] sm:$0xff]  ;;  %v579_v30 = vpack.c.bf16 %v182_v26, %v181_v25  ;;  %v183_v31 = vld [vmem:[#allocation7 + $0x40] sm:$0xff]  ;;  %v184_v32 = vld [vmem:[#allocation7 + $0x48] sm:$0xff] }
  0x51   :  { %550 = vmatpush3.bf16.msra.mxu0 %v549_v7  ;;  %v561_v33 = vpack.c.bf16 %v92_v29, %v91_v28  ;;  %v93_v34 = vld [vmem:[#allocation5 + $0x60] sm:$0xff]  ;;  %v94_v35 = vld [vmem:[#allocation5 + $0x68] sm:$0xff]  ;;  %v582_v36 = vpack.c.bf16 %v184_v32, %v183_v31  ;;  %v185_v37 = vld [vmem:[#allocation7 + $0x50] sm:$0xff] }
  0x52   :  { %551 = vmatprep.subr.bf16.mxu0 %v751_v0  ;;  %v186_v38 = vld [vmem:[#allocation7 + $0x58] sm:$0xff]  ;;  %v564_v39 = vpack.c.bf16 %v94_v35, %v93_v34  ;;  %v95_v40 = vld [vmem:[#allocation5 + $0x70] sm:$0xff]  ;;  %v187_v43 = vld [vmem:[#allocation7 + $0x60] sm:$0xff] }
  0x53   :  { %574 = vmatpush3.bf16.msra.mxu1 %v573_v18  ;;  %v96_v41 = vld [vmem:[#allocation5 + $0x78] sm:$0xff]  ;;  %v585_v42 = vpack.c.bf16 %v186_v38, %v185_v37  ;;  %v188_v44 = vld [vmem:[#allocation7 + $0x68] sm:$0xff]  ;;  %v189_v48 = vld [vmem:[#allocation7 + $0x70] sm:$0xff] }
  0x54   :  { %575 = vmatprep.subr.bf16.mxu1 %v751_v0  ;;  %v567_v45 = vpack.c.bf16 %v96_v41, %v95_v40  ;;  %v588_v46 = vpack.c.bf16 %v188_v44, %v187_v43  ;;  %v80_v47 = vld [vmem:[#allocation2] sm:$0xff]  ;;  %v269_v51 = vld [vmem:[#allocation8] sm:$0xff]  ;;  %v270_v52 = vld [vmem:[#allocation8 + $0x8] sm:$0xff] }
  0x55   :  { %553 = vmatpush3.bf16.msra.mxu0 %v552_v14  ;;  %v190_v49 = vld [vmem:[#allocation7 + $0x78] sm:$0xff]  ;;  %v271_v53 = vld [vmem:[#allocation8 + $0x10] sm:$0xff]  ;;  %v594_v54 = vpack.c.bf16 %v270_v52, %v269_v51  ;;  %v273_v57 = vld [vmem:[#allocation8 + $0x20] sm:$0xff] }
  0x56   :  { %554 = vmatprep.subr.bf16.mxu0 %v751_v0  ;;  %v591_v50 = vpack.c.bf16 %v190_v49, %v189_v48  ;;  %v272_v55 = vld [vmem:[#allocation8 + $0x18] sm:$0xff]  ;;  %v274_v58 = vld [vmem:[#allocation8 + $0x28] sm:$0xff]  ;;  %v275_v60 = vld [vmem:[#allocation8 + $0x30] sm:$0xff] }
  0x57   :  { %577 = vmatpush3.bf16.msra.mxu1 %v576_v24  ;;  %v597_v56 = vpack.c.bf16 %v272_v55, %v271_v53  ;;  %v600_v59 = vpack.c.bf16 %v274_v58, %v273_v57  ;;  %v276_v61 = vld [vmem:[#allocation8 + $0x38] sm:$0xff]  ;;  %v277_v63 = vld [vmem:[#allocation8 + $0x40] sm:$0xff]  ;;  %v279_v3 = vld [vmem:[#allocation8 + $0x50] sm:$0xff] }
  0x58   :  { %578 = vmatprep.subr.bf16.mxu1 %v751_v0  ;;  %v603_v62 = vpack.c.bf16 %v276_v61, %v275_v60  ;;  %v280_v4 = vld [vmem:[#allocation8 + $0x58] sm:$0xff]  ;;  %v281_v6 = vld [vmem:[#allocation8 + $0x60] sm:$0xff]  ;;  %v282_v7 = vld [vmem:[#allocation8 + $0x68] sm:$0xff] }
  0x59   :  { %556 = vmatpush3.bf16.msra.mxu0 %v555_v21  ;;  %v609_v5 = vpack.c.bf16 %v280_v4, %v279_v3  ;;  %v612_v8 = vpack.c.bf16 %v282_v7, %v281_v6  ;;  %v386_v9 = vld [vmem:[%s905_s2] ss:$0 sm:$0xff]  ;;  %v283_v14 = vld [vmem:[#allocation8 + $0x70] sm:$0xff]  ;;  %v362_v21 = vlaneseq }
  0x5a   :  { %557 = vmatprep.subr.bf16.mxu0 %v751_v0  ;;  %v284_v15 = vld [vmem:[#allocation8 + $0x78] sm:$0xff] }
  0x5b   :  { %580 = vmatpush3.bf16.msra.mxu1 %v579_v30  ;;  %v615_v16 = vpack.c.bf16 %v284_v15, %v283_v14  ;;  %v387_v17 = vld [vmem:[%s907_s4] ss:$0 sm:$0xff]  ;;  %v363_v24 = vand.u32 127, %v362_v21  ;;  %s715_s4 = scalar_lea.vmem %s376_s29, 128 }
  0x5c   :  { %581 = vmatprep.subr.bf16.mxu1 %v751_v0  ;;  %v388_v22 = vld [vmem:[%s909_s6] ss:$0 sm:$0xff]  ;;  %p716_p4 = scmp.ne.s32.totalorder %s376_s29, %s715_s4  ;;  %p721_p6 = scmp.lt.s32.totalorder %s715_s4, %s715_s4 }
  0x5d   :  { %559 = vmatpush3.bf16.msra.mxu0 %v558_v27  ;;  %vm364_vm1 = vcmp.ge.s32.totalorder %v363_v24, 4 }
  0x5e   :  { %560 = vmatprep.subr.bf16.mxu0 %v751_v0  ;;  %p722_p7 = por %p721_p6, %p720_p5 }
  0x5f   :  { %583 = vmatpush3.bf16.msra.mxu1 %v582_v36 }
  0x60   :  { %584 = vmatprep.subr.bf16.mxu1 %v751_v0  ;;  %p723_p8 = pnand %p722_p7, %p716_p4 }
  0x61   :  { %562 = vmatpush3.bf16.msra.mxu0 %v561_v33 }
  0x62   :  { %563 = vmatprep.subr.bf16.mxu0 %v751_v0 }
  0x63   :  { %586 = vmatpush3.bf16.msra.mxu1 %v585_v42 }
  0x64   :  { %587 = vmatprep.subr.bf16.mxu1 %v751_v0 }
  0x65   :  { %565 = vmatpush3.bf16.msra.mxu0 %v564_v39 }
  0x66   :  { %566 = vmatprep.subr.bf16.mxu0 %v751_v0 }
  0x67   :  { %589 = vmatpush3.bf16.msra.mxu1 %v588_v46 }
  0x68   :  { %590 = vmatprep.subr.bf16.mxu1 %v751_v0 }
  0x69   :  { %568 = vmatpush3.bf16.msra.mxu0 %v567_v45 }
  0x6a   :  { %593 = vmatprep.subr.bf16.mxu0 %v751_v0 }
  0x6b   :  { %592 = vmatpush3.bf16.msra.mxu1 %v591_v50 }
  0x6c   :  { %473 = vmatmul.mubr.f32.vlgmr.msra.gmra.mrb[0].mxu0 %v80_v47 }
  0x6d   :  { %542 = vmatprep.mubr.msk.f32.mxu0 %vm752_vm0, %v753_v1  ;;  %595 = vmatpush3.bf16.msra.mxu0 %v594_v54  ;;  %v278_v1 = vld [vmem:[#allocation8 + $0x48] sm:$0xff] }
  0x6e   :  { %596 = vmatprep.subr.bf16.mxu0 %v751_v0  ;;  %v606_v2 = vpack.c.bf16 %v278_v1, %v277_v63 }
  0x71   :  { %598 = vmatpush3.bf16.msra.mxu0 %v597_v56 }
  0x72   :  { %599 = vmatprep.subr.bf16.mxu0 %v751_v0 }
  0x75   :  { %601 = vmatpush3.bf16.msra.mxu0 %v600_v59 }
  0x76   :  { %602 = vmatprep.subr.bf16.mxu0 %v751_v0 }
  0x79   :  { %604 = vmatpush3.bf16.msra.mxu0 %v603_v62 }
  0x7a   :  { %605 = vmatprep.subr.bf16.mxu0 %v751_v0 }
  0x7d   :  { %607 = vmatpush3.bf16.msra.mxu0 %v606_v2 }
  0x7e   :  { %608 = vmatprep.subr.bf16.mxu0 %v751_v0 }
  0x81   :  { %610 = vmatpush3.bf16.msra.mxu0 %v609_v5 }
  0x82   :  { %611 = vmatprep.subr.bf16.mxu0 %v751_v0 }
  0x85   :  { %613 = vmatpush3.bf16.msra.mxu0 %v612_v8 }
  0x86   :  { %614 = vmatprep.subr.bf16.mxu0 %v751_v0 }
  0x89   :  { %616 = vmatpush3.bf16.msra.mxu0 %v615_v16 }
 0x13f   :  { %v170_v10 = vpop.f32.mrb[0].mxu0 }
 0x140   :  { %v171_v11 = vadd.f32 %v386_v9, %v170_v10  ;;  %v474_v12 = vpop.f32.mrb[1].mxu0 }
 0x142   :  { %v174_v13 = vmax.f32 %v171_v11, 0.0 }
 0x144   :  { %508 = vmatmul.mubr.f32.vlgmr.msra.gmra.mrb[0].mxu1 %v174_v13 }
 0x217   :  { %v264_v18 = vpop.f32.mrb[0].mxu1 }
 0x218   :  { %v265_v19 = vadd.f32 %v387_v17, %v264_v18  ;;  %v509_v0 = vpop.f32.mrb[1].mxu1 }
 0x21a   :  { %v268_v20 = vmax.f32 %v265_v19, 0.0 }
 0x21c   :  { %543 = vmatmul.mubr.f32.vlgmr.msra.gmra.mrb[2].mxu0 %v268_v20 }
 0x2ef   :  { %v358_v23 = vpop.f32.mrb[2].mxu0 }
 0x2f0   :  { %v359_v25 = vadd.f32 %v388_v22, %v358_v23  ;;  %v544_v26 = vpop.f32.mrb[3].mxu0 }
 0x2f2   :  { %v365_v27 = vmax.f32 %v359_v25, -20.0 }
 0x2f4   :  { %v366_v28 = vmin.f32 %v365_v27, 2.0 }
 0x2f6   :  { %v367_v29 = vsel %vm364_vm1, %v366_v28, %v359_v25 }
 0x2f7   :  { %368 = vst [vmem:[#allocation10] sm:$0xff] %v367_v29 }
 0x2f8   :  { %726 = shalt.err (!%p723_p8)
}
 0x2f9   :  { %s727_s8 = scalar_lea.hbm %s910_s7, 128 }
 0x2fa   :  { %p728_p9 = scmp.ne.s32.totalorder %s910_s7, %s727_s8  ;;  %p731_p10 = scmp.lt.u32.totalorder %s727_s8, %s910_s7 }
 0x2fc   :  { %p733_p11 = pnand %p731_p10, %p728_p9 }
 0x2fe   :  { %736 = shalt.err (!%p733_p11)
}
 0x2ff   :  { %378 = dma.vmem_to_hbm [thread:$0]  %s376_s29, 128, %s910_s7, [#allocation4]  }
 0x300   :  { %743 = dma.done.wait [#allocation4], 128  }
 0x301   :  { %744 = vsyncadd [#allocation4], 4294967168 }
 0x302   :  { %382 = vsyncpa [#allocation3], 1 }
 0x303   :  { %383 = vsyncpa [#allocation6], 1 }
 0x304   :  { %384 = vsyncpa [#allocation9], 1 }
 0x305   :  { %385 = vsyncpa [#allocation4], 1 }

</bundles_post_ra>
